<compile_context>
chip_gen: v6e
topology: v6e:2x2x1
jax: 0.10.0
libtpu: 0.0.40
codegen_flags: <defaults>
</compile_context>

<pallas_src>
import math

import jax
import jax.numpy as jnp
from jax.experimental import pallas as pl
from jax.experimental.pallas import tpu as pltpu


# ----------------------------------------------------------------------------
# Kernel
# ----------------------------------------------------------------------------
def _make_block_kernel(n_heads: int, Bb: int, T: int, C: int,
                       gelu_approximate: bool = False):
    H = n_heads
    D = C // H
    R = Bb * T          # rows processed per grid step
    eps = 1e-5

    def layernorm(v, gamma, beta):
        mean = jnp.mean(v, axis=-1, keepdims=True)
        var = jnp.mean((v - mean) ** 2, axis=-1, keepdims=True)
        return (v - mean) * jax.lax.rsqrt(var + eps) * gamma + beta

    if gelu_approximate:
        def gelu(v):
            c = math.sqrt(2.0 / math.pi)
            return 0.5 * v * (1.0 + jnp.tanh(c * (v + 0.044715 * v * v * v)))
    else:
        def gelu(v):
            # PyTorch nn.GELU() default: exact erf-based GELU.
            return 0.5 * v * (1.0 + jax.lax.erf(v * (1.0 / math.sqrt(2.0))))

    def kernel(x_ref,
               wqkv_ref, bqkv_ref, wp_ref, bp_ref,
               g1_ref, be1_ref,
               w1_ref, b1_ref, w2_ref, b2_ref,
               g2_ref, be2_ref,
               out_ref):
        x = x_ref[...]                       # (R, C) f32 rows (Bb sequences)
        cdt = wqkv_ref.dtype                 # matmul operand dtype (bf16/f32)

        # Fused q/k/v projection: one MXU pass over x.  The 1/sqrt(D) scale is
        # already folded into the q slice of wqkv/bqkv by the wrapper.
        qkv = jnp.dot(x.astype(cdt), wqkv_ref[...],
                      preferred_element_type=jnp.float32) + bqkv_ref[...]

        # Heads-batched relayout: (R, C) -> (Bb*H, T, D).  Cast to the matmul
        # dtype first so the relayout moves half the bytes when bf16.
        def to_heads(t):
            t4 = t.reshape(Bb, T, H, D)
            return jnp.transpose(t4, (0, 2, 1, 3)).reshape(Bb * H, T, D)

        qh = to_heads(qkv[:, :C].astype(cdt))           # scaled q
        kh = to_heads(qkv[:, C:2 * C].astype(cdt))
        vh = to_heads(qkv[:, 2 * C:].astype(cdt))

        # Additive causal mask, built once per grid step.
        rows = jax.lax.broadcasted_iota(jnp.int32, (T, T), 0)
        cols = jax.lax.broadcasted_iota(jnp.int32, (T, T), 1)
        neg_mask = jnp.where(rows >= cols, 0.0, -jnp.inf)[None]   # (1, T, T)

        # ONE batched score matmul + ONE batched p@v matmul over Bb*H heads;
        # f32 softmax statistics.
        s = jnp.einsum("btd,bsd->bts", qh, kh,
                       preferred_element_type=jnp.float32) + neg_mask
        m = jnp.max(s, axis=-1, keepdims=True)
        p = jnp.exp(s - m)
        denom = jnp.sum(p, axis=-1, keepdims=True)
        p = p * pl.reciprocal(denom, approx=True)                 # EUP vrcp

        o = jnp.einsum("bts,bsd->btd", p.astype(cdt), vh,
                       preferred_element_type=jnp.float32)        # (Bb*H,T,D)

        # Single relayout back to (R, C); feed the projection directly.
        attn = jnp.transpose(o.reshape(Bb, H, T, D),
                             (0, 2, 1, 3)).reshape(R, C)
        attn_out = jnp.dot(attn.astype(cdt), wp_ref[...],
                           preferred_element_type=jnp.float32) + bp_ref[...]

        # --- residual + LayerNorm 1 (f32 statistics) ---
        x1 = layernorm(x + attn_out, g1_ref[...], be1_ref[...])

        # --- MLP: Linear(4C) -> GELU -> Linear(C) ---
        h1 = jnp.dot(x1.astype(cdt), w1_ref[...],
                     preferred_element_type=jnp.float32) + b1_ref[...]
        h1 = gelu(h1)
        h2 = jnp.dot(h1.astype(cdt), w2_ref[...],
                     preferred_element_type=jnp.float32) + b2_ref[...]

        # --- residual + LayerNorm 2 ---
        out_ref[...] = layernorm(x1 + h2, g2_ref[...], be2_ref[...])

    return kernel


# ----------------------------------------------------------------------------
# Wrapper helpers
# ----------------------------------------------------------------------------
def _choose_block_b(B: int, T: int, target_rows: int = 512,
                    min_grid: int = 2) -> int:
    """Largest divisor of B keeping Bb*T near target_rows, with >= min_grid
    grid steps so both v7x TensorCores get work under 'parallel' semantics."""
    bb = max(1, min(B, target_rows // max(T, 1)))
    while B % bb:
        bb -= 1
    while bb > 1 and B // bb < min_grid:
        bb = max(1, bb // 2)
        while B % bb:
            bb -= 1
    return bb


def _vmem_limit_bytes(R: int, C: int, H: int, T: int, weights) -> int:
    """Resident weights + double-buffered x/out blocks + intermediates,
    +25% headroom, capped at the physical per-core VMEM capacity."""
    w_bytes = sum(int(w.size) * w.dtype.itemsize for w in weights)
    io = 2 * 2 * R * C * 4                       # x + out, double-buffered
    qkv = R * 3 * C * 4                          # fused projection (f32 acc)
    heads = 3 * R * C * 4                        # relayouted q/k/v copies
    scores = 2 * (R // max(T, 1)) * H * T * T * 4  # s and p
    mlp = R * 4 * C * 4                          # hidden activation
    need = int((w_bytes + io + qkv + heads + scores + mlp) * 1.25) + (1 << 20)
    try:
        cap = pltpu.get_tpu_info().vmem_capacity_bytes - (4 << 20)
    except Exception:
        cap = 56 << 20                           # conservative (v7x-safe)
    return min(max(need, 32 << 20), cap)


# ----------------------------------------------------------------------------
# Wrapper
# ----------------------------------------------------------------------------
def block_forward(x, params, n_heads, *, block_b=None,
                  matmul_dtype=jnp.bfloat16, gelu_approximate=False):
    """x: (B, T, C) float32. params: dict of weights (see init_params)."""
    B, T, C = x.shape
    assert C % n_heads == 0
    D = C // n_heads
    inv_sqrt_d = 1.0 / math.sqrt(D)
    f32 = jnp.float32

    Bb = block_b if block_b is not None else _choose_block_b(B, T)
    assert B % Bb == 0, "block_b must divide the batch size"
    R = Bb * T
    grid = (B // Bb,)

    # Fused QKV weight/bias; attention scale folded into the q slice.
    wqkv = jnp.concatenate(
        [params["wq"] * inv_sqrt_d, params["wk"], params["wv"]], axis=1
    ).astype(matmul_dtype)
    bqkv = jnp.concatenate(
        [params["bq"] * inv_sqrt_d, params["bk"], params["bv"]], axis=1
    ).astype(f32)

    weights = [
        wqkv, bqkv,
        params["wp"].astype(matmul_dtype), params["bp"].astype(f32),
        params["ln1_g"].astype(f32), params["ln1_b"].astype(f32),
        params["w1"].astype(matmul_dtype), params["b1"].astype(f32),
        params["w2"].astype(matmul_dtype), params["b2"].astype(f32),
        params["ln2_g"].astype(f32), params["ln2_b"].astype(f32),
    ]

    kernel = _make_block_kernel(n_heads, Bb, T, C,
                                gelu_approximate=gelu_approximate)

    # Grid-invariant weights/biases: single unblocked VMEM copy, no
    # double-buffering.
    weight_spec = pl.BlockSpec(memory_space=pltpu.MemorySpace.VMEM)

    x2d = x.reshape(B * T, C)   # Bb full sequences per grid step

    vmem_limit = _vmem_limit_bytes(R, C, n_heads, T, weights)

    # TODO(synk): emit bf16 output (and accept bf16 x) if the downstream
    #             consumer allows it, to halve HBM streaming bytes.
    out2d = pl.pallas_call(
        kernel,
        out_shape=jax.ShapeDtypeStruct((B * T, C), jnp.float32),
        grid_spec=pltpu.PrefetchScalarGridSpec(
            num_scalar_prefetch=0,
            grid=grid,
            in_specs=[pl.BlockSpec((R, C), lambda i: (i, 0))]
                     + [weight_spec] * len(weights),
            out_specs=pl.BlockSpec((R, C), lambda i: (i, 0)),
        ),
        compiler_params=pltpu.CompilerParams(
            dimension_semantics=("parallel",),
            vmem_limit_bytes=int(vmem_limit)),
    )(x2d, *weights)

    return out2d.reshape(B, T, C)


# ----------------------------------------------------------------------------
# Deterministic parameter init (shapes from Block.__init__)
# ----------------------------------------------------------------------------
def init_params(key, h_dim):
    ks = jax.random.split(key, 12)
    s = 0.02

    def lin(kw, kb, fan_in, fan_out):
        # stored as (in, out) so kernel computes x @ W + b
        w = s * jax.random.normal(kw, (fan_in, fan_out), jnp.float32)
        b = s * jax.random.normal(kb, (1, fan_out), jnp.float32)
        return w, b

    wq, bq = lin(ks[0], ks[1], h_dim, h_dim)
    wk, bk = lin(ks[2], ks[3], h_dim, h_dim)
    wv, bv = lin(ks[4], ks[5], h_dim, h_dim)
    wp, bp = lin(ks[6], ks[7], h_dim, h_dim)
    w1, b1 = lin(ks[8], ks[9], h_dim, 4 * h_dim)
    w2, b2 = lin(ks[10], ks[11], 4 * h_dim, h_dim)

    ones = jnp.ones((1, h_dim), jnp.float32)
    zeros = jnp.zeros((1, h_dim), jnp.float32)
    return dict(
        wq=wq, bq=bq, wk=wk, bk=bk, wv=wv, bv=bv, wp=wp, bp=bp,
        w1=w1, b1=b1, w2=w2, b2=b2,
        ln1_g=ones, ln1_b=zeros, ln2_g=ones, ln2_b=zeros,
    )


# ----------------------------------------------------------------------------
# Pure-JAX reference (mirrors the PyTorch forward, eval mode)
# ----------------------------------------------------------------------------
def block_reference(x, p, n_heads):
    B, T, C = x.shape
    D = C // n_heads

    def ln(v, g, b):
        m = jnp.mean(v, -1, keepdims=True)
        var = jnp.mean((v - m) ** 2, -1, keepdims=True)
        return (v - m) / jnp.sqrt(var + 1e-5) * g + b

    q = (x @ p["wq"] + p["bq"]).reshape(B, T, n_heads, D).transpose(0, 2, 1, 3)
    k = (x @ p["wk"] + p["bk"]).reshape(B, T, n_heads, D).transpose(0, 2, 1, 3)
    v = (x @ p["wv"] + p["bv"]).reshape(B, T, n_heads, D).transpose(0, 2, 1, 3)
    w = jnp.einsum("bhtd,bhsd->bhts", q, k) / math.sqrt(D)
    mask = jnp.tril(jnp.ones((T, T)))[None, None]
    w = jnp.where(mask == 0, -jnp.inf, w)
    w = jax.nn.softmax(w, axis=-1)
    att = jnp.einsum("bhts,bhsd->bhtd", w, v).transpose(0, 2, 1, 3).reshape(B, T, C)
    att = att @ p["wp"] + p["bp"]

    x1 = ln(x + att, p["ln1_g"], p["ln1_b"])
    h = jax.nn.gelu(x1 @ p["w1"] + p["b1"], approximate=False)
    h = h @ p["w2"] + p["b2"]
    return ln(x1 + h, p["ln2_g"], p["ln2_b"])


if __name__ == "__main__":
    B, T, C, n_heads = 2, 8, 32, 2   # toy config consistent with the module
    key = jax.random.PRNGKey(0)
    kx, kp = jax.random.split(key)
    x = jax.random.normal(kx, (B, T, C), jnp.float32)
    params = init_params(kp, C)

    ref = block_reference(x, params, n_heads)

    # Strict-parity path (f32 matmuls): tight tolerance (approx reciprocal
    # in the softmax denominator is the only relaxation).
    out_f32 = jax.block_until_ready(
        block_forward(x, params, n_heads, matmul_dtype=jnp.float32))
    assert jnp.allclose(out_f32, ref, atol=1e-3, rtol=1e-3), \
        "f32 path mismatch vs reference"

    # Default fast path (bf16 matmul operands, f32 stats/accumulation).
    out_bf16 = jax.block_until_ready(block_forward(x, params, n_heads))
    assert jnp.allclose(out_bf16, ref, atol=2e-2, rtol=2e-2), \
        "bf16 path mismatch vs reference"

    print("KERNEL_OK")
</pallas_src>

<mosaic_0001>
module attributes {stable_mosaic.version = 11 : i64} {
  func.func @kernel(%arg0: i32, %arg1: memref<8x32xf32, #tpu.memory_space<vmem>>, %arg2: memref<32x96xf32, #tpu.memory_space<vmem>>, %arg3: memref<1x96xf32, #tpu.memory_space<vmem>>, %arg4: memref<32x32xf32, #tpu.memory_space<vmem>>, %arg5: memref<1x32xf32, #tpu.memory_space<vmem>>, %arg6: memref<1x32xf32, #tpu.memory_space<vmem>>, %arg7: memref<1x32xf32, #tpu.memory_space<vmem>>, %arg8: memref<32x128xf32, #tpu.memory_space<vmem>>, %arg9: memref<1x128xf32, #tpu.memory_space<vmem>>, %arg10: memref<128x32xf32, #tpu.memory_space<vmem>>, %arg11: memref<1x32xf32, #tpu.memory_space<vmem>>, %arg12: memref<1x32xf32, #tpu.memory_space<vmem>>, %arg13: memref<1x32xf32, #tpu.memory_space<vmem>>, %arg14: memref<8x32xf32, #tpu.memory_space<vmem>>) attributes {dimension_semantics = [#tpu.dimension_semantics<parallel>], iteration_bounds = array<i64: 2>, scalar_prefetch = 0 : i64, scratch_operands = 0 : i64, tpu.core_type = #tpu.core_type<tc>, window_params = [{transform_indices = @transform_0, window_bounds = array<i64: 8, 32>}, {pipeline_mode = #tpu.pipeline_mode<synchronous>, transform_indices = @transform_1, window_bounds = array<i64: 32, 96>}, {pipeline_mode = #tpu.pipeline_mode<synchronous>, transform_indices = @transform_2, window_bounds = array<i64: 1, 96>}, {pipeline_mode = #tpu.pipeline_mode<synchronous>, transform_indices = @transform_3, window_bounds = array<i64: 32, 32>}, {pipeline_mode = #tpu.pipeline_mode<synchronous>, transform_indices = @transform_4, window_bounds = array<i64: 1, 32>}, {pipeline_mode = #tpu.pipeline_mode<synchronous>, transform_indices = @transform_5, window_bounds = array<i64: 1, 32>}, {pipeline_mode = #tpu.pipeline_mode<synchronous>, transform_indices = @transform_6, window_bounds = array<i64: 1, 32>}, {pipeline_mode = #tpu.pipeline_mode<synchronous>, transform_indices = @transform_7, window_bounds = array<i64: 32, 128>}, {pipeline_mode = #tpu.pipeline_mode<synchronous>, transform_indices = @transform_8, window_bounds = array<i64: 1, 128>}, {pipeline_mode = #tpu.pipeline_mode<synchronous>, transform_indices = @transform_9, window_bounds = array<i64: 128, 32>}, {pipeline_mode = #tpu.pipeline_mode<synchronous>, transform_indices = @transform_10, window_bounds = array<i64: 1, 32>}, {pipeline_mode = #tpu.pipeline_mode<synchronous>, transform_indices = @transform_11, window_bounds = array<i64: 1, 32>}, {pipeline_mode = #tpu.pipeline_mode<synchronous>, transform_indices = @transform_12, window_bounds = array<i64: 1, 32>}, {transform_indices = @transform_13, window_bounds = array<i64: 8, 32>}]} {
    %c0 = arith.constant 0 : index
    %c0_0 = arith.constant 0 : index
    %0 = vector.load %arg1[%c0, %c0_0] : memref<8x32xf32, #tpu.memory_space<vmem>>, vector<8x32xf32>
    %c0_1 = arith.constant 0 : index
    %c0_2 = arith.constant 0 : index
    %1 = vector.load %arg2[%c0_1, %c0_2] : memref<32x96xf32, #tpu.memory_space<vmem>>, vector<32x96xf32>
    %cst = arith.constant dense<0.000000e+00> : vector<8x96xf32>
    %2 = tpu.matmul %0, %1, %cst {dimension_numbers = #tpu.dot_dimension_numbers<[1], [0], [0], [1], [0, 0, 1, 1], [], []>} : vector<8x32xf32>, vector<32x96xf32>, vector<8x96xf32> -> vector<8x96xf32>
    %c0_3 = arith.constant 0 : index
    %c0_4 = arith.constant 0 : index
    %3 = vector.load %arg3[%c0_3, %c0_4] : memref<1x96xf32, #tpu.memory_space<vmem>>, vector<1x96xf32>
    %4 = vector.broadcast %3 : vector<1x96xf32> to vector<8x96xf32>
    %5 = arith.addf %2, %4 : vector<8x96xf32>
    %6 = vector.extract_strided_slice %5 {offsets = [0, 0], sizes = [8, 32], strides = [1, 1]} : vector<8x96xf32> to vector<8x32xf32>
    %7 = vector.shape_cast %6 : vector<8x32xf32> to vector<1x8x2x16xf32>
    %8 = tpu.transpose %7, [0, 2, 1, 3] : vector<1x8x2x16xf32> -> vector<1x2x8x16xf32>
    %9 = vector.shape_cast %8 : vector<1x2x8x16xf32> to vector<2x8x16xf32>
    %10 = vector.extract_strided_slice %5 {offsets = [0, 32], sizes = [8, 32], strides = [1, 1]} : vector<8x96xf32> to vector<8x32xf32>
    %11 = vector.shape_cast %10 : vector<8x32xf32> to vector<1x8x2x16xf32>
    %12 = tpu.transpose %11, [0, 2, 1, 3] : vector<1x8x2x16xf32> -> vector<1x2x8x16xf32>
    %13 = vector.shape_cast %12 : vector<1x2x8x16xf32> to vector<2x8x16xf32>
    %14 = vector.extract_strided_slice %5 {offsets = [0, 64], sizes = [8, 32], strides = [1, 1]} : vector<8x96xf32> to vector<8x32xf32>
    %15 = vector.shape_cast %14 : vector<8x32xf32> to vector<1x8x2x16xf32>
    %16 = tpu.transpose %15, [0, 2, 1, 3] : vector<1x8x2x16xf32> -> vector<1x2x8x16xf32>
    %17 = vector.shape_cast %16 : vector<1x2x8x16xf32> to vector<2x8x16xf32>
    %18 = tpu.iota {dimensions = array<i32: 0>} : vector<8x8xi32>
    %19 = tpu.iota {dimensions = array<i32: 1>} : vector<8x8xi32>
    %20 = arith.cmpi sge, %18, %19 : vector<8x8xi32>
    %cst_5 = arith.constant 0.000000e+00 : f32
    %cst_6 = arith.constant 0xFF800000 : f32
    %21 = vector.broadcast %cst_5 : f32 to vector<8x8xf32>
    %22 = vector.broadcast %cst_6 : f32 to vector<8x8xf32>
    %23 = arith.select %20, %21, %22 : vector<8x8xi1>, vector<8x8xf32>
    %24 = vector.shape_cast %23 : vector<8x8xf32> to vector<1x8x8xf32>
    "tpu.trace_start"() <{level = 10 : i32, message = "btd,bsd->bts"}> : () -> ()
    %cst_7 = arith.constant dense<0.000000e+00> : vector<2x8x8xf32>
    %25 = tpu.matmul %9, %13, %cst_7 {dimension_numbers = #tpu.dot_dimension_numbers<[2], [2], [1], [1], [0, 0, 0, 1, 1, 1], [0], [0]>} : vector<2x8x16xf32>, vector<2x8x16xf32>, vector<2x8x8xf32> -> vector<2x8x8xf32>
    "tpu.trace_stop"() : () -> ()
    %26 = vector.broadcast %24 : vector<1x8x8xf32> to vector<2x8x8xf32>
    %27 = arith.addf %25, %26 : vector<2x8x8xf32>
    %cst_8 = arith.constant dense<0xFF800000> : vector<2x8xf32>
    %28 = vector.multi_reduction <maximumf>, %27, %cst_8 [2] : vector<2x8x8xf32> to vector<2x8xf32>
    %29 = vector.shape_cast %28 : vector<2x8xf32> to vector<2x8x1xf32>
    %30 = vector.broadcast %29 : vector<2x8x1xf32> to vector<2x8x8xf32>
    %31 = arith.subf %27, %30 : vector<2x8x8xf32>
    %32 = math.exp %31 : vector<2x8x8xf32>
    %cst_9 = arith.constant dense<0.000000e+00> : vector<2x8xf32>
    %33 = vector.multi_reduction <add>, %32, %cst_9 [2] : vector<2x8x8xf32> to vector<2x8xf32>
    %34 = vector.shape_cast %33 : vector<2x8xf32> to vector<2x8x1xf32>
    %35 = tpu.reciprocal %34 {approx = true} : vector<2x8x1xf32> -> vector<2x8x1xf32>
    %36 = vector.broadcast %35 : vector<2x8x1xf32> to vector<2x8x8xf32>
    %37 = arith.mulf %32, %36 : vector<2x8x8xf32>
    "tpu.trace_start"() <{level = 10 : i32, message = "bts,bsd->btd"}> : () -> ()
    %cst_10 = arith.constant dense<0.000000e+00> : vector<2x8x16xf32>
    %38 = tpu.matmul %37, %17, %cst_10 {dimension_numbers = #tpu.dot_dimension_numbers<[2], [1], [1], [2], [0, 0, 0, 1, 1, 2], [0], [0]>} : vector<2x8x8xf32>, vector<2x8x16xf32>, vector<2x8x16xf32> -> vector<2x8x16xf32>
    "tpu.trace_stop"() : () -> ()
    %39 = vector.shape_cast %38 : vector<2x8x16xf32> to vector<1x2x8x16xf32>
    %40 = tpu.transpose %39, [0, 2, 1, 3] : vector<1x2x8x16xf32> -> vector<1x8x2x16xf32>
    %41 = vector.shape_cast %40 : vector<1x8x2x16xf32> to vector<8x32xf32>
    %c0_11 = arith.constant 0 : index
    %c0_12 = arith.constant 0 : index
    %42 = vector.load %arg4[%c0_11, %c0_12] : memref<32x32xf32, #tpu.memory_space<vmem>>, vector<32x32xf32>
    %cst_13 = arith.constant dense<0.000000e+00> : vector<8x32xf32>
    %43 = tpu.matmul %41, %42, %cst_13 {dimension_numbers = #tpu.dot_dimension_numbers<[1], [0], [0], [1], [0, 0, 1, 1], [], []>} : vector<8x32xf32>, vector<32x32xf32>, vector<8x32xf32> -> vector<8x32xf32>
    %c0_14 = arith.constant 0 : index
    %c0_15 = arith.constant 0 : index
    %44 = vector.load %arg5[%c0_14, %c0_15] : memref<1x32xf32, #tpu.memory_space<vmem>>, vector<1x32xf32>
    %45 = vector.broadcast %44 : vector<1x32xf32> to vector<8x32xf32>
    %46 = arith.addf %43, %45 : vector<8x32xf32>
    %47 = arith.addf %0, %46 : vector<8x32xf32>
    %c0_16 = arith.constant 0 : index
    %c0_17 = arith.constant 0 : index
    %48 = vector.load %arg6[%c0_16, %c0_17] : memref<1x32xf32, #tpu.memory_space<vmem>>, vector<1x32xf32>
    %c0_18 = arith.constant 0 : index
    %c0_19 = arith.constant 0 : index
    %49 = vector.load %arg7[%c0_18, %c0_19] : memref<1x32xf32, #tpu.memory_space<vmem>>, vector<1x32xf32>
    %cst_20 = arith.constant dense<0.000000e+00> : vector<8xf32>
    %50 = vector.multi_reduction <add>, %47, %cst_20 [1] : vector<8x32xf32> to vector<8xf32>
    %51 = vector.shape_cast %50 : vector<8xf32> to vector<8x1xf32>
    %cst_21 = arith.constant 3.200000e+01 : f32
    %52 = vector.broadcast %cst_21 : f32 to vector<8x1xf32>
    %53 = arith.divf %51, %52 : vector<8x1xf32>
    %54 = vector.broadcast %53 : vector<8x1xf32> to vector<8x32xf32>
    %55 = arith.subf %47, %54 : vector<8x32xf32>
    %56 = arith.mulf %55, %55 : vector<8x32xf32>
    %cst_22 = arith.constant dense<0.000000e+00> : vector<8xf32>
    %57 = vector.multi_reduction <add>, %56, %cst_22 [1] : vector<8x32xf32> to vector<8xf32>
    %58 = vector.shape_cast %57 : vector<8xf32> to vector<8x1xf32>
    %cst_23 = arith.constant 3.200000e+01 : f32
    %59 = vector.broadcast %cst_23 : f32 to vector<8x1xf32>
    %60 = arith.divf %58, %59 : vector<8x1xf32>
    %61 = vector.broadcast %53 : vector<8x1xf32> to vector<8x32xf32>
    %62 = arith.subf %47, %61 : vector<8x32xf32>
    %cst_24 = arith.constant 9.99999974E-6 : f32
    %63 = vector.broadcast %cst_24 : f32 to vector<8x1xf32>
    %64 = arith.addf %60, %63 : vector<8x1xf32>
    %65 = math.rsqrt %64 : vector<8x1xf32>
    %66 = vector.broadcast %65 : vector<8x1xf32> to vector<8x32xf32>
    %67 = arith.mulf %62, %66 : vector<8x32xf32>
    %68 = vector.broadcast %48 : vector<1x32xf32> to vector<8x32xf32>
    %69 = arith.mulf %67, %68 : vector<8x32xf32>
    %70 = vector.broadcast %49 : vector<1x32xf32> to vector<8x32xf32>
    %71 = arith.addf %69, %70 : vector<8x32xf32>
    %c0_25 = arith.constant 0 : index
    %c0_26 = arith.constant 0 : index
    %72 = vector.load %arg8[%c0_25, %c0_26] : memref<32x128xf32, #tpu.memory_space<vmem>>, vector<32x128xf32>
    %cst_27 = arith.constant dense<0.000000e+00> : vector<8x128xf32>
    %73 = tpu.matmul %71, %72, %cst_27 {dimension_numbers = #tpu.dot_dimension_numbers<[1], [0], [0], [1], [0, 0, 1, 1], [], []>} : vector<8x32xf32>, vector<32x128xf32>, vector<8x128xf32> -> vector<8x128xf32>
    %c0_28 = arith.constant 0 : index
    %c0_29 = arith.constant 0 : index
    %74 = vector.load %arg9[%c0_28, %c0_29] : memref<1x128xf32, #tpu.memory_space<vmem>>, vector<1x128xf32>
    %75 = vector.broadcast %74 : vector<1x128xf32> to vector<8x128xf32>
    %76 = arith.addf %73, %75 : vector<8x128xf32>
    %cst_30 = arith.constant 5.000000e-01 : f32
    %77 = vector.broadcast %cst_30 : f32 to vector<8x128xf32>
    %78 = arith.mulf %77, %76 : vector<8x128xf32>
    %cst_31 = arith.constant 0.707106769 : f32
    %79 = vector.broadcast %cst_31 : f32 to vector<8x128xf32>
    %80 = arith.mulf %76, %79 : vector<8x128xf32>
    %81 = math.erf %80 : vector<8x128xf32>
    %cst_32 = arith.constant 1.000000e+00 : f32
    %82 = vector.broadcast %cst_32 : f32 to vector<8x128xf32>
    %83 = arith.addf %82, %81 : vector<8x128xf32>
    %84 = arith.mulf %78, %83 : vector<8x128xf32>
    %c0_33 = arith.constant 0 : index
    %c0_34 = arith.constant 0 : index
    %85 = vector.load %arg10[%c0_33, %c0_34] : memref<128x32xf32, #tpu.memory_space<vmem>>, vector<128x32xf32>
    %cst_35 = arith.constant dense<0.000000e+00> : vector<8x32xf32>
    %86 = tpu.matmul %84, %85, %cst_35 {dimension_numbers = #tpu.dot_dimension_numbers<[1], [0], [0], [1], [0, 0, 1, 1], [], []>} : vector<8x128xf32>, vector<128x32xf32>, vector<8x32xf32> -> vector<8x32xf32>
    %c0_36 = arith.constant 0 : index
    %c0_37 = arith.constant 0 : index
    %87 = vector.load %arg11[%c0_36, %c0_37] : memref<1x32xf32, #tpu.memory_space<vmem>>, vector<1x32xf32>
    %88 = vector.broadcast %87 : vector<1x32xf32> to vector<8x32xf32>
    %89 = arith.addf %86, %88 : vector<8x32xf32>
    %90 = arith.addf %71, %89 : vector<8x32xf32>
    %c0_38 = arith.constant 0 : index
    %c0_39 = arith.constant 0 : index
    %91 = vector.load %arg12[%c0_38, %c0_39] : memref<1x32xf32, #tpu.memory_space<vmem>>, vector<1x32xf32>
    %c0_40 = arith.constant 0 : index
    %c0_41 = arith.constant 0 : index
    %92 = vector.load %arg13[%c0_40, %c0_41] : memref<1x32xf32, #tpu.memory_space<vmem>>, vector<1x32xf32>
    %cst_42 = arith.constant dense<0.000000e+00> : vector<8xf32>
    %93 = vector.multi_reduction <add>, %90, %cst_42 [1] : vector<8x32xf32> to vector<8xf32>
    %94 = vector.shape_cast %93 : vector<8xf32> to vector<8x1xf32>
    %cst_43 = arith.constant 3.200000e+01 : f32
    %95 = vector.broadcast %cst_43 : f32 to vector<8x1xf32>
    %96 = arith.divf %94, %95 : vector<8x1xf32>
    %97 = vector.broadcast %96 : vector<8x1xf32> to vector<8x32xf32>
    %98 = arith.subf %90, %97 : vector<8x32xf32>
    %99 = arith.mulf %98, %98 : vector<8x32xf32>
    %cst_44 = arith.constant dense<0.000000e+00> : vector<8xf32>
    %100 = vector.multi_reduction <add>, %99, %cst_44 [1] : vector<8x32xf32> to vector<8xf32>
    %101 = vector.shape_cast %100 : vector<8xf32> to vector<8x1xf32>
    %cst_45 = arith.constant 3.200000e+01 : f32
    %102 = vector.broadcast %cst_45 : f32 to vector<8x1xf32>
    %103 = arith.divf %101, %102 : vector<8x1xf32>
    %104 = vector.broadcast %96 : vector<8x1xf32> to vector<8x32xf32>
    %105 = arith.subf %90, %104 : vector<8x32xf32>
    %cst_46 = arith.constant 9.99999974E-6 : f32
    %106 = vector.broadcast %cst_46 : f32 to vector<8x1xf32>
    %107 = arith.addf %103, %106 : vector<8x1xf32>
    %108 = math.rsqrt %107 : vector<8x1xf32>
    %109 = vector.broadcast %108 : vector<8x1xf32> to vector<8x32xf32>
    %110 = arith.mulf %105, %109 : vector<8x32xf32>
    %111 = vector.broadcast %91 : vector<1x32xf32> to vector<8x32xf32>
    %112 = arith.mulf %110, %111 : vector<8x32xf32>
    %113 = vector.broadcast %92 : vector<1x32xf32> to vector<8x32xf32>
    %114 = arith.addf %112, %113 : vector<8x32xf32>
    %c0_47 = arith.constant 0 : index
    %c0_48 = arith.constant 0 : index
    %115 = vector.load %arg14[%c0_47, %c0_48] : memref<8x32xf32, #tpu.memory_space<vmem>>, vector<8x32xf32>
    tpu.vector_store %arg14[%c0_47, %c0_48], %114 {strides = array<i32>} : memref<8x32xf32, #tpu.memory_space<vmem>>, vector<8x32xf32>,
    return
  }
  func.func @transform_0(%arg0: i32) -> (i32, i32) {
    %c0_i32 = arith.constant 0 : i32
    %c0_i32_0 = arith.constant 0 : i32
    return %arg0, %c0_i32 : i32, i32
  }
  func.func @transform_1(%arg0: i32) -> (i32, i32) {
    %c0_i32 = arith.constant 0 : i32
    %c0_i32_0 = arith.constant 0 : i32
    %c0_i32_1 = arith.constant 0 : i32
    return %c0_i32, %c0_i32_0 : i32, i32
  }
  func.func @transform_2(%arg0: i32) -> (i32, i32) {
    %c0_i32 = arith.constant 0 : i32
    %c0_i32_0 = arith.constant 0 : i32
    %c0_i32_1 = arith.constant 0 : i32
    return %c0_i32, %c0_i32_0 : i32, i32
  }
  func.func @transform_3(%arg0: i32) -> (i32, i32) {
    %c0_i32 = arith.constant 0 : i32
    %c0_i32_0 = arith.constant 0 : i32
    %c0_i32_1 = arith.constant 0 : i32
    return %c0_i32, %c0_i32_0 : i32, i32
  }
  func.func @transform_4(%arg0: i32) -> (i32, i32) {
    %c0_i32 = arith.constant 0 : i32
    %c0_i32_0 = arith.constant 0 : i32
    %c0_i32_1 = arith.constant 0 : i32
    return %c0_i32, %c0_i32_0 : i32, i32
  }
  func.func @transform_5(%arg0: i32) -> (i32, i32) {
    %c0_i32 = arith.constant 0 : i32
    %c0_i32_0 = arith.constant 0 : i32
    %c0_i32_1 = arith.constant 0 : i32
    return %c0_i32, %c0_i32_0 : i32, i32
  }
  func.func @transform_6(%arg0: i32) -> (i32, i32) {
    %c0_i32 = arith.constant 0 : i32
    %c0_i32_0 = arith.constant 0 : i32
    %c0_i32_1 = arith.constant 0 : i32
    return %c0_i32, %c0_i32_0 : i32, i32
  }
  func.func @transform_7(%arg0: i32) -> (i32, i32) {
    %c0_i32 = arith.constant 0 : i32
    %c0_i32_0 = arith.constant 0 : i32
    %c0_i32_1 = arith.constant 0 : i32
    return %c0_i32, %c0_i32_0 : i32, i32
  }
  func.func @transform_8(%arg0: i32) -> (i32, i32) {
    %c0_i32 = arith.constant 0 : i32
    %c0_i32_0 = arith.constant 0 : i32
    %c0_i32_1 = arith.constant 0 : i32
    return %c0_i32, %c0_i32_0 : i32, i32
  }
  func.func @transform_9(%arg0: i32) -> (i32, i32) {
    %c0_i32 = arith.constant 0 : i32
    %c0_i32_0 = arith.constant 0 : i32
    %c0_i32_1 = arith.constant 0 : i32
    return %c0_i32, %c0_i32_0 : i32, i32
  }
  func.func @transform_10(%arg0: i32) -> (i32, i32) {
    %c0_i32 = arith.constant 0 : i32
    %c0_i32_0 = arith.constant 0 : i32
    %c0_i32_1 = arith.constant 0 : i32
    return %c0_i32, %c0_i32_0 : i32, i32
  }
  func.func @transform_11(%arg0: i32) -> (i32, i32) {
    %c0_i32 = arith.constant 0 : i32
    %c0_i32_0 = arith.constant 0 : i32
    %c0_i32_1 = arith.constant 0 : i32
    return %c0_i32, %c0_i32_0 : i32, i32
  }
  func.func @transform_12(%arg0: i32) -> (i32, i32) {
    %c0_i32 = arith.constant 0 : i32
    %c0_i32_0 = arith.constant 0 : i32
    %c0_i32_1 = arith.constant 0 : i32
    return %c0_i32, %c0_i32_0 : i32, i32
  }
  func.func @transform_13(%arg0: i32) -> (i32, i32) {
    %c0_i32 = arith.constant 0 : i32
    %c0_i32_0 = arith.constant 0 : i32
    return %arg0, %c0_i32 : i32, i32
  }
}

</mosaic_0001>

<bundles_post_ra>
// kernel: tpu_custom_call.1
= control target key start
LH: loop header
LB: loop body
LE: loop exit
PB: predicated region body
PF: predicated region fallthrough
CT: control target
= control target key end

     0   :  { %s2457_s0 = inlined_call_operand.vmem [shape: f32[16,32], index: 0, kind: input, shape index: {}]   ;;  %s2458_s1 = inlined_call_operand.vmem [shape: f32[32,96], index: 1, kind: input, shape index: {}]   ;;  %s2459_s2 = inlined_call_operand.vmem [shape: f32[1,96], index: 2, kind: input, shape index: {}]   ;;  %s2460_s3 = inlined_call_operand.vmem [shape: f32[32,32], index: 3, kind: input, shape index: {}]   ;;  %s2461_s4 = inlined_call_operand.vmem [shape: f32[1,32], index: 4, kind: input, shape index: {}]   ;;  %s2462_s5 = inlined_call_operand.vmem [shape: f32[1,32], index: 5, kind: input, shape index: {}]   ;;  %s2463_s6 = inlined_call_operand.vmem [shape: f32[1,32], index: 6, kind: input, shape index: {}]   ;;  %s2464_s7 = inlined_call_operand.vmem [shape: f32[32,128], index: 7, kind: input, shape index: {}]   ;;  %s2465_s8 = inlined_call_operand.vmem [shape: f32[1,128], index: 8, kind: input, shape index: {}]   ;;  %s2466_s9 = inlined_call_operand.vmem [shape: f32[128,32], index: 9, kind: input, shape index: {}]   ;;  %s2467_s10 = inlined_call_operand.vmem [shape: f32[1,32], index: 10, kind: input, shape index: {}]   ;;  %s2468_s11 = inlined_call_operand.vmem [shape: f32[1,32], index: 11, kind: input, shape index: {}]   ;;  %s2469_s12 = inlined_call_operand.vmem [shape: f32[1,32], index: 12, kind: input, shape index: {}]   ;;  %s2470_s13 = inlined_call_operand.hbm [shape: f32[16,32], index: 13, kind: output, shape index: {}]  }
   0x1   :  { %2471 = sst [smem:[#allocation6_spill]] %s2457_s0 }
   0x2   :  { %2472 = sst [smem:[#allocation7_spill]] %s2458_s1 }
   0x3   :  { %2473 = sst [smem:[#allocation8_spill]] %s2459_s2 }
   0x4   :  { %2474 = sst [smem:[#allocation9_spill]] %s2460_s3 }
   0x5   :  { %18 = vsyncpa [#allocation3], 0 }
   0x6   :  { %20 = vsyncpa [#allocation3 + $0x1], 0  ;;  %s2103_s25 = smov 0   ;;  %s2105_s26 = smov 0  }
   0x7   :  { %s2107_s27 = smov 0   ;;  %s2109_s28 = smov 0  }
   0x8 LB: > { %s2124_s29 = sadd.s32 4294967295, %s2021_s28   ;;  %s1736_s30 = sadd.s32 4294967294, %s2021_s28   ;;  %s2021_s28 = sphi %s2109_s28, %s2486_s28   ;;  %s2017_s27 = sphi %s2107_s27, %s2485_s27   ;;  %s2013_s26 = sphi %s2105_s26, %s2484_s26   ;;  %s2009_s25 = sphi %s2103_s25, %s2483_s25  }
   0x9   : > { %s2128_s14 = sadd.s32 1, %s2021_s28   ;;  %s311_s15 = sadd.s32 1, %s2017_s27 }
   0xa   : > { %s308_s16 = ssub.s32 %s2021_s28, %s2128_s14  ;;  %p321_p0 = scmp.ne.s32.totalorder %s2017_s27, %s2013_s26 }
   0xb   : > { %p309_p1 = scmp.eq.s32.totalorder %s308_s16, 0  ;;  %p322_p2 = scmp.eq.s32.totalorder %s2124_s29, 1 }
   0xc   : > { %p327_p3 = scmp.ne.s32.totalorder %s2013_s26, %s2009_s25  ;;  %p328_p4 = scmp.eq.s32.totalorder %s1736_s30, 1 }
   0xd   : > { %s2139_s17 = scalar_select %p309_p1, %s2017_s27, %s311_s15  }
   0xe   : > { %p2141_p5 = por %p322_p2, %p321_p0  ;;  %p2145_p6 = por %p328_p4, %p327_p3 }
   0xf   : > { %2475 = sst [smem:[#allocation5_spill]] %s2139_s17  ;;  %p1739_p7 = scmp.ge.s32.totalorder %s2021_s28, 1 }
  0x10   : > { %p389_p8 = scmp.lt.s32.totalorder %s2021_s28, 3 }
  0x12   : > { %p390_p9 = pnand %p1739_p7, %p389_p8 }
  0x13   : > { %s2478_s1 = sld [smem:[#allocation7_spill]] (!%p390_p9)  ;;  %p432_p10 = scmp.lt.s32.totalorder (!%p390_p9), %s2124_s29, 1 }
  0x14   : > { %393 = sbr.rel (%p390_p9) target bundleno = 2563 (0xa03), region = 72  ;;  %s2479_s0 = sld [smem:[#allocation6_spill]] (!%p390_p9) }
  0x15   : > { %s2480_s2 = sld [smem:[#allocation8_spill]] (!%p390_p9)  ;;  %s2026_s15 = smov (!%p390_p9), 96  }
  0x16   : > { %s2481_s3 = sld [smem:[#allocation9_spill]] (!%p390_p9)  ;;  %s429_s30 = sand.u32 (!%p390_p9), 1, %s2013_s26  }
  0x17   : > { %s1768_s22 = sshll.u32 (!%p390_p9), %s2124_s29, 7 }
  0x19   : > { %v440_v0 = vld [vmem:[%s2478_s1 + $0x18] sm:$0xff]  ;;  %v2023_v1 = vmov 0.0   ;;  %v439_v2 = vld [vmem:[%s2478_s1 + $0x10] sm:$0xff]  ;;  %vm2024_vm0 = vmmov 0   ;;  %s433_s24 = scalar_select %p432_p10, %s2124_s29, 1  ;;  %v438_v3 = vld [vmem:[%s2478_s1 + $0x8] sm:$0xff]  ;;  %v530_v13 = vlaneseq }
  0x1a   : > { %1811 = vmatprep.subr.mxu1 %v2023_v1  ;;  %1819 = vmatprep.mubr.msk.f32.mxu1 %vm2024_vm0, %v2023_v1  ;;  %v437_v4 = vld [vmem:[%s2478_s1] sm:$0xff]  ;;  %vm448_vm1 = vcmask 261120   ;;  %v2027_v11 = vmov 1983009808   ;;  %v2028_v19 = vmov 1934713408  }
  0x1b   : > { %1812 = vmatpush3.msra.mxu1 %v440_v0  ;;  %1832 = vmatprep.subr.mxu0 %v2023_v1  ;;  %s1741_s16 = sshll.u32 %s433_s24, 3  ;;  %v1742_v6 = vld [vmem:[%s2480_s2] ss:$0 sm:$0xff]  ;;  %v528_v12 = vunpack.c.l.s4 %v2027_v11  ;;  %v2195_v15 = vshrl.u32 %v530_v13, 7  ;;  %v559_v20 = vunpack.c.l.s4 %v2028_v19  ;;  %vm892_vm2 = vcmask 130048   ;;  %s1675_s2 = scalar_lea.hbm %s2470_s13, %s1768_s22 }
  0x1c   : > { %1813 = vmatprep.subr.mxu1 %v2023_v1  ;;  %1834 = vmatprep.mubr.msk.f32.mxu0 %vm2024_vm0, %v2023_v1  ;;  %s435_s17 = scalar_lea.vmem %s2479_s0, %s1741_s16  ;;  %vm1045_vm4 = vcmask 64512   ;;  %s2030_s16 = smov 64  }
  0x1d   : > { %1814 = vmatpush3.msra.mxu1 %v439_v2  ;;  %v2176_v5 = vld [vmem:[%s435_s17] sm:$0xff]  ;;  %s2025_s17 = smov 112   ;;  %v529_v14 = vunpack.c.0.s8 %v528_v12  ;;  %v560_v22 = vunpack.c.0.s8 %v559_v20 }
  0x1e   : > { %1815 = vmatprep.subr.mxu1 %v2023_v1 }
  0x1f   : > { %1816 = vmatpush3.msra.mxu1 %v438_v3  ;;  %v2202_v18 = vsub.s32 %v529_v14, %v2195_v15  ;;  %v2211_v29 = vsub.s32 %v560_v22, %v2195_v15  ;;  %v889_v22 = vand.u32 127, %v530_v13 }
  0x20   : > { %1817 = vmatprep.subr.mxu1 %v2023_v1 }
  0x21   : > { %1818 = vmatpush3.msra.mxu1 %v437_v4  ;;  %vm890_vm3 = vcmp.ge.s32.totalorder %v2195_v15, %v889_v22 }
  0x22   : > { %1820 = vmatmul.mubr.msk.f32.vlgmr.msra.gmra.mxu1 %vm448_vm1, %v2176_v5  ;;  %1822 = vmatprep.subr.mxu1 %v2023_v1 }
  0x23   : > { %1824 = vmatprep.mubr.msk.f32.mxu1 %vm2024_vm0, %v2023_v1 }
  0xe2   : > { %v518_v7 = vpop.f32.mrf.mxu1 }
  0xe3   : > { %v2187_v8 = vadd.f32 %v1742_v6, %v518_v7 }
  0xe4   : > { %v1821_v9 = vpop.f32.mrf.mxu1 }
  0xe5   : > { %523 = vrot.lane.b32.xlu0 %v2187_v8, %s2025_s17  ;;  %v526_v17 = vcombine.high %v2187_v8, %v2023_v1  ;;  %v533_v25 = vrot.slane %v2187_v8, %v2202_v18  ;;  %s1740_s17 = sshll.u32 %s429_s30, 3 }
  0xe6   : > { %s431_s23 = scalar_lea.vmem [#allocation2], %s1740_s17 }
  0xe7   : > { %v540_v23 = vrot.slane %v526_v17, %v2202_v18  ;;  %s1677_s24 = sshll.u32 %s431_s23, 4  ;;  %s1678_s24 = int_to_ptr.vmem [resolvable:$true] %s1677_s24 }
  0xe9   : > { %642 = vrot.lane.b32.xlu0 %v2187_v8, %s2026_s15 }
 0x157   : > { %v2191_v10 = vpop.permute.xlu0 %523 }
 0x158   : > { %644 = vrot.lane.b32.xlu1 %v2191_v10, %s2026_s15  ;;  %v541_v16 = vcombine.high %v2191_v10, %v2023_v1  ;;  %v548_v24 = vrot.slane %v2191_v10, %v2202_v18  ;;  %s1961_s15 = scalar_lea.vmem %s1678_s24, 128 }
 0x159   : > { %p1962_p11 = scmp.ne.s32.totalorder %s1678_s24, %s1961_s15 }
 0x15a   : > { %v555_v21 = vrot.slane %v541_v16, %v2202_v18  ;;  %v556_v30 = vcombine.low %v533_v25, %v548_v24  ;;  %v557_v31 = vcombine.high %v533_v25, %v548_v24 }
 0x15b   : > { %v643_v28 = vpop.permute.xlu0 %642  ;;  %p1963_p12 = pnand %p1962_p11, %p2141_p5 }
 0x15c   : > { %v572_v26 = vcombine.low %v540_v23, %v555_v21  ;;  %v573_v27 = vcombine.high %v540_v23, %v555_v21  ;;  %v648_v32 = vcombine.high %v643_v28, %v2023_v1  ;;  %v655_v36 = vrot.slane %v643_v28, %v2202_v18 }
 0x15d   : > { %v564_v39 = vrot.slane %v556_v30, %v2211_v29  ;;  %v571_v40 = vrot.slane %v557_v31, %v2211_v29  ;;  %v2029_v23 = vmov -inf   ;;  %p1964_p13 = pneg %p1963_p12 }
 0x15e   : > { %v580_v33 = vrot.slane %v572_v26, %v2211_v29  ;;  %v587_v34 = vrot.slane %v573_v27, %v2211_v29  ;;  %v662_v41 = vrot.slane %v648_v32, %v2202_v18  ;;  %v891_v24 = vsel %vm890_vm3, 0.0, %v2029_v23 }
 0x15f   : > { %v592_v51 = vcombine.low %v564_v39, %v571_v40  ;;  %v1744_v52 = vcombine.high %v564_v39, %v571_v40 }
 0x160   : > { %v608_v45 = vcombine.low %v580_v33, %v587_v34  ;;  %v1745_v46 = vcombine.high %v580_v33, %v587_v34 }
 0x161   : > { %v599_v63 = vrot.slane %v592_v51, %v2202_v18  ;;  %v607_v0 = vrot.slane %v1744_v52, %v2202_v18 }
 0x162   : > { %v615_v57 = vrot.slane %v608_v45, %v2202_v18  ;;  %v623_v58 = vrot.slane %v1745_v46, %v2202_v18 }
 0x163   : > { %v624_v9 = vcombine.low %v599_v63, %v607_v0 }
 0x164   : > { %v632_v6 = vcombine.low %v615_v57, %v623_v58 }
 0x165   : > { %v631_v17 = vrot.slane %v624_v9, %v2211_v29 }
 0x166   : > { %v639_v14 = vrot.slane %v632_v6, %v2211_v29 }
 0x168   : > { %v640_v19 = vcombine.low %v631_v17, %v639_v14  ;;  %v641_v21 = vcombine.high %v631_v17, %v639_v14 }
 0x1ca   : > { %v645_v35 = vpop.permute.xlu1 %644 }
 0x1cb   : > { %v663_v37 = vcombine.high %v645_v35, %v2023_v1  ;;  %v670_v38 = vrot.slane %v645_v35, %v2202_v18 }
 0x1cd   : > { %v677_v42 = vrot.slane %v663_v37, %v2202_v18  ;;  %v678_v43 = vcombine.low %v655_v36, %v670_v38  ;;  %v679_v44 = vcombine.high %v655_v36, %v670_v38 }
 0x1cf   : > { %v686_v47 = vrot.slane %v678_v43, %v2211_v29  ;;  %v693_v48 = vrot.slane %v679_v44, %v2211_v29  ;;  %v694_v49 = vcombine.low %v662_v41, %v677_v42  ;;  %v695_v50 = vcombine.high %v662_v41, %v677_v42 }
 0x1d1   : > { %v702_v53 = vrot.slane %v694_v49, %v2211_v29  ;;  %v709_v54 = vrot.slane %v695_v50, %v2211_v29  ;;  %v714_v55 = vcombine.low %v686_v47, %v693_v48  ;;  %v1746_v56 = vcombine.high %v686_v47, %v693_v48 }
 0x1d3   : > { %v721_v59 = vrot.slane %v714_v55, %v2202_v18  ;;  %v729_v60 = vrot.slane %v1746_v56, %v2202_v18  ;;  %v730_v61 = vcombine.low %v702_v53, %v709_v54  ;;  %v1747_v62 = vcombine.high %v702_v53, %v709_v54 }
 0x1d5   : > { %v737_v2 = vrot.slane %v730_v61, %v2202_v18  ;;  %v745_v3 = vrot.slane %v1747_v62, %v2202_v18  ;;  %v746_v4 = vcombine.low %v721_v59, %v729_v60 }
 0x1d7   : > { %v754_v7 = vcombine.low %v737_v2, %v745_v3  ;;  %v753_v11 = vrot.slane %v746_v4, %v2211_v29 }
 0x1d9   : > { %v761_v12 = vrot.slane %v754_v7, %v2211_v29 }
 0x1db   : > { %v762_v16 = vcombine.low %v753_v11, %v761_v12  ;;  %v763_v20 = vcombine.high %v753_v11, %v761_v12 }
 0x1dd   : > { %1823 = vmatpush3.xpose.msk.msra.mxu1 %vm892_vm2, %v762_v16 }
 0x1de   : > { %1827 = vmatprep.subr.mxu1 %v2023_v1 }
 0x1e0   : > { %1825 = vmatmul.mubr.msk.f32.vlgmr.msra.gmra.mxu1 %vm892_vm2, %v640_v19  ;;  %v1338_v19 = vld [vmem:[%s2481_s3 + $0x18] sm:$0xff] }
 0x1e1   : > { %1828 = vmatpush3.xpose.msk.msra.mxu1 %vm892_vm2, %v763_v20  ;;  %1829 = vmatprep.mubr.msk.f32.mxu1 %vm2024_vm0, %v2023_v1  ;;  %v1337_v20 = vld [vmem:[%s2481_s3 + $0x10] sm:$0xff] }
 0x1e2   : > { %1837 = vmatprep.subr.mxu1 %v2023_v1 }
 0x1e4   : > { %1830 = vmatmul.mubr.msk.f32.vlgmr.msra.gmra.mxu1 %vm892_vm2, %v641_v21  ;;  %v1336_v21 = vld [vmem:[%s2481_s3 + $0x8] sm:$0xff] }
 0x1e5   : > { %1839 = vmatprep.mubr.msk.f32.mxu1 %vm2024_vm0, %v2023_v1 }
 0x2a0   : > { %v965_v25 = vpop.f32.mrf.mxu1 }
 0x2a1   : > { %v966_v26 = vadd.f32 %v965_v25, %v891_v24 }
 0x2a2   : > { %v1826_v27 = vpop.f32.mrf.mxu1 }
 0x2a3   : > { %v1046_v28 = vsel %vm1045_vm4, %v966_v26, -inf }
 0x2a4   : > { %1047 = vmax.xlane.f32.xlu1 %v1046_v28  ;;  %v1041_v30 = vpop.f32.mrf.mxu1 }
 0x2a5   : > { %v1042_v31 = vadd.f32 %v1041_v30, %v891_v24 }
 0x2a6   : > { %v1831_v32 = vpop.f32.mrf.mxu1 }
 0x2a7   : > { %v1049_v33 = vsel %vm1045_vm4, %v1042_v31, -inf }
 0x2a8   : > { %1050 = vmax.xlane.f32.xlu0 %v1049_v33 }
 0x32d   : > { %v1048_v34 = vpop.xlane.xlu1 %1047 }
 0x32e   : > { %v1052_v35 = vsub.f32 %v966_v26, %v1048_v34 }
 0x330   : > { %v1054_v13 = vmul.f32 1.442695, %v1052_v35 }
 0x331   : > { %v1051_v36 = vpop.xlane.xlu0 %1050 }
 0x332   : > { %1947 = vpow2.f32 %v1054_v13  ;;  %v1053_v15 = vsub.f32 %v1042_v31, %v1051_v36 }
 0x334   : > { %v1056_v37 = vmul.f32 1.442695, %v1053_v15 }
 0x336   : > { %1949 = vpow2.f32 %v1056_v37  ;;  %v1335_v37 = vld [vmem:[%s2481_s3] sm:$0xff]  ;;  %s1664_s3 = scalar_lea.sflag [#allocation3], %s429_s30 }
 0x33f   : > { %v1948_v38 = vpop.eup %1947 }
 0x340   : > { %v1058_v39 = vsel %vm1045_vm4, %v1948_v38, 0.0 }
 0x341   : > { %1059 = vadd.xlane.f32.xlu0 %v1058_v39 }
 0x343   : > { %v1950_v40 = vpop.eup %1949 }
 0x344   : > { %v1061_v41 = vsel %vm1045_vm4, %v1950_v40, 0.0 }
 0x345   : > { %1062 = vadd.xlane.f32.xlu1 %v1061_v41 }
 0x356   : > { %766 = vrot.lane.b32.xlu1 %v2191_v10, %s2030_s16 }
 0x357   : > { %764 = vrot.lane.b32.xlu0 %v2187_v8, %s2030_s16  ;;  %s2031_s16 = smov 16  }
 0x3ca   : > { %v1060_v42 = vpop.xlane.xlu0 %1059 }
 0x3cb   : > { %1951 = vrcp.f32 %v1060_v42 }
 0x3ce   : > { %v1063_v43 = vpop.xlane.xlu1 %1062  ;;  %v765_v44 = vpop.permute.xlu0 %764 }
 0x3cf   : > { %v770_v45 = vcombine.high %v765_v44, %v2023_v1  ;;  %v777_v47 = vrot.slane %v765_v44, %v2202_v18  ;;  %1953 = vrcp.f32 %v1063_v43 }
 0x3d1   : > { %v784_v50 = vrot.slane %v770_v45, %v2202_v18 }
 0x3d2   : > { %v767_v46 = vpop.permute.xlu1 %766 }
 0x3d3   : > { %v785_v48 = vcombine.high %v767_v46, %v2023_v1  ;;  %v792_v49 = vrot.slane %v767_v46, %v2202_v18 }
 0x3d5   : > { %v799_v10 = vrot.slane %v785_v48, %v2202_v18  ;;  %v800_v51 = vcombine.low %v777_v47, %v792_v49  ;;  %v801_v8 = vcombine.high %v777_v47, %v792_v49 }
 0x3d7   : > { %v808_v52 = vrot.slane %v800_v51, %v2211_v29  ;;  %v815_v53 = vrot.slane %v801_v8, %v2211_v29  ;;  %v816_v54 = vcombine.low %v784_v50, %v799_v10  ;;  %v817_v55 = vcombine.high %v784_v50, %v799_v10 }
 0x3d8   : > { %v1952_v6 = vpop.eup %1951 }
 0x3d9   : > { %v824_v56 = vrot.slane %v816_v54, %v2211_v29  ;;  %v831_v57 = vrot.slane %v817_v55, %v2211_v29  ;;  %v836_v58 = vcombine.low %v808_v52, %v815_v53  ;;  %v1748_v59 = vcombine.high %v808_v52, %v815_v53 }
 0x3da   : > { %v1066_v16 = vmul.f32 %v1952_v6, %v1948_v38  ;;  %v1552_v6 = vld [vmem:[%s2466_s9 + $0x68] sm:$0xff] }
 0x3db   : > { %v843_v60 = vrot.slane %v836_v58, %v2202_v18  ;;  %v851_v61 = vrot.slane %v1748_v59, %v2202_v18  ;;  %v852_v62 = vcombine.low %v824_v56, %v831_v57  ;;  %v1749_v63 = vcombine.high %v824_v56, %v831_v57 }
 0x3dc   : > { %v1954_v7 = vpop.eup %1953 }
 0x3dd   : > { %v859_v0 = vrot.slane %v852_v62, %v2202_v18  ;;  %v867_v2 = vrot.slane %v1749_v63, %v2202_v18  ;;  %v868_v3 = vcombine.low %v843_v60, %v851_v61  ;;  %v1067_v17 = vmul.f32 %v1954_v7, %v1950_v40  ;;  %v1453_v63 = vld [vmem:[%s2464_s7 + $0x18] sm:$0xff]  ;;  %v1551_v7 = vld [vmem:[%s2466_s9 + $0x60] sm:$0xff] }
 0x3df   : > { %v876_v4 = vcombine.low %v859_v0, %v867_v2  ;;  %v875_v9 = vrot.slane %v868_v3, %v2211_v29  ;;  %v1452_v0 = vld [vmem:[%s2464_s7 + $0x10] sm:$0xff]  ;;  %v1450_v2 = vld [vmem:[%s2464_s7] sm:$0xff]  ;;  %v1554_v3 = vld [vmem:[%s2466_s9 + $0x78] sm:$0xff] }
 0x3e1   : > { %v883_v11 = vrot.slane %v876_v4, %v2211_v29  ;;  %v1553_v4 = vld [vmem:[%s2466_s9 + $0x70] sm:$0xff] }
 0x3e3   : > { %v884_v12 = vcombine.low %v875_v9, %v883_v11  ;;  %v885_v14 = vcombine.high %v875_v9, %v883_v11 }
 0x3e5   : > { %1833 = vmatpush3.msra.mxu0 %v884_v12  ;;  %1838 = vmatpush3.msra.mxu1 %v885_v14 }
 0x3e6   : > { %1835 = vmatmul.mubr.msk.f32.vlgmr.msra.gmra.mxu0 %vm1045_vm4, %v1066_v16  ;;  %1840 = vmatmul.mubr.msk.f32.vlgmr.msra.gmra.mxu1 %vm1045_vm4, %v1067_v17  ;;  %v1760_v16 = vld [vmem:[%s2462_s5] ss:$0 sm:$0xff] }
 0x3e7   : > { %1842 = vmatprep.subr.mxu1 %v2023_v1  ;;  %1850 = vmatprep.mubr.msk.f32.mxu1 %vm2024_vm0, %v2023_v1 }
 0x3e8   : > { %1864 = vmatprep.subr.mxu0 %v2023_v1  ;;  %1896 = vmatprep.mubr.msk.f32.mxu0 %vm2024_vm0, %v2023_v1 }
 0x3e9   : > { %1843 = vmatpush3.msra.mxu1 %v1338_v19  ;;  %1865 = vmatpush3.msra.mxu0 %v1554_v3  ;;  %v1761_v19 = vld [vmem:[%s2463_s6] ss:$0 sm:$0xff] }
 0x3ea   : > { %1844 = vmatprep.subr.mxu1 %v2023_v1  ;;  %1866 = vmatprep.subr.mxu0 %v2023_v1 }
 0x3eb   : > { %1845 = vmatpush3.msra.mxu1 %v1337_v20  ;;  %1867 = vmatpush3.msra.mxu0 %v1553_v4 }
 0x3ec   : > { %1846 = vmatprep.subr.mxu1 %v2023_v1  ;;  %1868 = vmatprep.subr.mxu0 %v2023_v1 }
 0x3ed   : > { %1847 = vmatpush3.msra.mxu1 %v1336_v21  ;;  %1869 = vmatpush3.msra.mxu0 %v1552_v6 }
 0x3ee   : > { %1848 = vmatprep.subr.mxu1 %v2023_v1  ;;  %1870 = vmatprep.subr.mxu0 %v2023_v1 }
 0x3ef   : > { %1849 = vmatpush3.msra.mxu1 %v1335_v37  ;;  %1871 = vmatpush3.msra.mxu0 %v1551_v7 }
 0x3f0   : > { %1853 = vmatprep.subr.mxu1 %v2023_v1  ;;  %1872 = vmatprep.subr.mxu0 %v2023_v1 }
 0x4a6   : > { %v1137_v22 = vpop.f32.mrf.mxu0  ;;  %v1210_v23 = vpop.f32.mrf.mxu1 }
 0x4a7   : > { %v1214_v24 = vcombine.high %v1137_v22, %v2023_v1  ;;  %v1221_v25 = vrot.slane %v1137_v22, %v2202_v18  ;;  %v1229_v26 = vcombine.high %v1210_v23, %v2023_v1  ;;  %v1236_v27 = vrot.slane %v1210_v23, %v2202_v18  ;;  %v1550_v22 = vld [vmem:[%s2466_s9 + $0x58] sm:$0xff]  ;;  %v1549_v23 = vld [vmem:[%s2466_s9 + $0x50] sm:$0xff] }
 0x4a8   : > { %v1836_v28 = vpop.f32.mrf.mxu0  ;;  %v1841_v30 = vpop.f32.mrf.mxu1  ;;  %1873 = vmatpush3.msra.mxu0 %v1550_v22 }
 0x4a9   : > { %v1228_v31 = vrot.slane %v1214_v24, %v2202_v18  ;;  %v1243_v32 = vrot.slane %v1229_v26, %v2202_v18  ;;  %v1244_v33 = vcombine.low %v1221_v25, %v1236_v27  ;;  %v1245_v34 = vcombine.high %v1221_v25, %v1236_v27  ;;  %1874 = vmatprep.subr.mxu0 %v2023_v1  ;;  %v1548_v24 = vld [vmem:[%s2466_s9 + $0x48] sm:$0xff]  ;;  %v1547_v25 = vld [vmem:[%s2466_s9 + $0x40] sm:$0xff]  ;;  %v1546_v26 = vld [vmem:[%s2466_s9 + $0x38] sm:$0xff] }
 0x4aa   : > { %1875 = vmatpush3.msra.mxu0 %v1549_v23  ;;  %v1545_v27 = vld [vmem:[%s2466_s9 + $0x30] sm:$0xff]  ;;  %v1544_v28 = vld [vmem:[%s2466_s9 + $0x28] sm:$0xff]  ;;  %v1543_v30 = vld [vmem:[%s2466_s9 + $0x20] sm:$0xff] }
 0x4ab   : > { %v1252_v35 = vrot.slane %v1244_v33, %v2211_v29  ;;  %v1259_v13 = vrot.slane %v1245_v34, %v2211_v29  ;;  %v1260_v36 = vcombine.low %v1228_v31, %v1243_v32  ;;  %v1261_v15 = vcombine.high %v1228_v31, %v1243_v32  ;;  %1876 = vmatprep.subr.mxu0 %v2023_v1  ;;  %v1542_v31 = vld [vmem:[%s2466_s9 + $0x18] sm:$0xff]  ;;  %v1541_v32 = vld [vmem:[%s2466_s9 + $0x10] sm:$0xff]  ;;  %v1540_v33 = vld [vmem:[%s2466_s9 + $0x8] sm:$0xff] }
 0x4ac   : > { %1877 = vmatpush3.msra.mxu0 %v1548_v24  ;;  %v1539_v34 = vld [vmem:[%s2466_s9] sm:$0xff] }
 0x4ad   : > { %v1268_v38 = vrot.slane %v1260_v36, %v2211_v29  ;;  %v1275_v39 = vrot.slane %v1261_v15, %v2211_v29  ;;  %v1280_v40 = vcombine.low %v1252_v35, %v1259_v13  ;;  %v1756_v41 = vcombine.high %v1252_v35, %v1259_v13  ;;  %1878 = vmatprep.subr.mxu0 %v2023_v1  ;;  %v1762_v35 = vld [vmem:[%s2465_s8] ss:$0 sm:$0xff] }
 0x4ae   : > { %1879 = vmatpush3.msra.mxu0 %v1547_v25 }
 0x4af   : > { %v1287_v42 = vrot.slane %v1280_v40, %v2202_v18  ;;  %v1295_v43 = vrot.slane %v1756_v41, %v2202_v18  ;;  %v1296_v44 = vcombine.low %v1268_v38, %v1275_v39  ;;  %v1757_v45 = vcombine.high %v1268_v38, %v1275_v39  ;;  %1880 = vmatprep.subr.mxu0 %v2023_v1 }
 0x4b0   : > { %1881 = vmatpush3.msra.mxu0 %v1546_v26 }
 0x4b1   : > { %v1303_v46 = vrot.slane %v1296_v44, %v2202_v18  ;;  %v1311_v47 = vrot.slane %v1757_v45, %v2202_v18  ;;  %v1312_v48 = vcombine.low %v1287_v42, %v1295_v43  ;;  %v1758_v18 = vld [vmem:[%s2461_s4] ss:$0 sm:$0xff]  ;;  %1882 = vmatprep.subr.mxu0 %v2023_v1 }
 0x4b2   : > { %1883 = vmatpush3.msra.mxu0 %v1545_v27  ;;  %v1764_v42 = vld [vmem:[%s2467_s10] ss:$0 sm:$0xff] }
 0x4b3   : > { %v1320_v49 = vcombine.low %v1303_v46, %v1311_v47  ;;  %v1319_v50 = vrot.slane %v1312_v48, %v2211_v29  ;;  %1884 = vmatprep.subr.mxu0 %v2023_v1 }
 0x4b4   : > { %1885 = vmatpush3.msra.mxu0 %v1544_v28 }
 0x4b5   : > { %v1327_v10 = vrot.slane %v1320_v49, %v2211_v29  ;;  %1886 = vmatprep.subr.mxu0 %v2023_v1 }
 0x4b6   : > { %1887 = vmatpush3.msra.mxu0 %v1543_v30 }
 0x4b7   : > { %v1329_v51 = vcombine.high %v1319_v50, %v1327_v10  ;;  %v1328_v8 = vcombine.low %v1319_v50, %v1327_v10  ;;  %1888 = vmatprep.subr.mxu0 %v2023_v1 }
 0x4b8   : > { %1889 = vmatpush3.msra.mxu0 %v1542_v31 }
 0x4b9   : > { %1331 = vrot.lane.b32.xlu1 %v1329_v51, %s2031_s16  ;;  %1890 = vmatprep.subr.mxu0 %v2023_v1  ;;  %s2032_s16 = smov [#allocation2]  }
 0x4ba   : > { %1891 = vmatpush3.msra.mxu0 %v1541_v32  ;;  %s1965_s20 = sshll.u32 %s2032_s16, 4  ;;  %s1966_s20 = int_to_ptr.vmem [resolvable:$false] %s1965_s20 }
 0x4bb   : > { %1892 = vmatprep.subr.mxu0 %v2023_v1  ;;  %s1967_s29 = scalar_lea.vmem %s1966_s20, 256  ;;  %p1968_p0 = scmp.lt.s32.totalorder %s1678_s24, %s1966_s20 }
 0x4bc   : > { %1893 = vmatpush3.msra.mxu0 %v1540_v33  ;;  %p1969_p1 = scmp.lt.s32.totalorder %s1967_s29, %s1961_s15 }
 0x4bd   : > { %1894 = vmatprep.subr.mxu0 %v2023_v1 }
 0x4be   : > { %1895 = vmatpush3.msra.mxu0 %v1539_v34  ;;  %p1970_p2 = por %p1969_p1, %p1968_p0 }
 0x4c0   : > { %p1971_p3 = pnand %p1970_p2, %p1964_p13 }
 0x52b   : > { %v1332_v52 = vpop.permute.xlu1 %1331 }
 0x52c   : > { %v1334_v53 = vsel %vm892_vm2, %v1328_v8, %v1332_v52 }
 0x52d   : > { %1851 = vmatmul.mubr.msk.f32.vlgmr.msra.gmra.mxu1 %vm448_vm1, %v1334_v53 }
 0x52e   : > { %1861 = vmatprep.mubr.msk.f32.mxu1 %vm2024_vm0, %v2023_v1  ;;  %1854 = vmatpush3.msra.mxu1 %v1453_v63 }
 0x52f   : > { %1855 = vmatprep.subr.mxu1 %v2023_v1 }
 0x530   : > { %1856 = vmatpush3.msra.mxu1 %v1452_v0 }
 0x531   : > { %1857 = vmatprep.subr.mxu1 %v2023_v1 }
 0x5ed   : > { %v1415_v54 = vpop.f32.mrf.mxu1 }
 0x5ee   : > { %v1416_v55 = vadd.f32 %v1758_v18, %v1415_v54  ;;  %v1765_v18 = vld [vmem:[%s2468_s11] ss:$0 sm:$0xff] }
 0x5ef   : > { %v1852_v56 = vpop.f32.mrf.mxu1 }
 0x5f0   : > { %v1419_v29 = vadd.f32 %v1416_v55, %v2176_v5  ;;  %v1451_v5 = vld [vmem:[%s2464_s7 + $0x8] sm:$0xff]  ;;  %v1766_v55 = vld [vmem:[%s2469_s12] ss:$0 sm:$0xff] }
 0x5f1   : > { %1858 = vmatpush3.msra.mxu1 %v1451_v5 }
 0x5f2   : > { %v1422_v57 = vsel %vm448_vm1, %v1419_v29, 0.0  ;;  %1859 = vmatprep.subr.mxu1 %v2023_v1 }
 0x5f3   : > { %1423 = vadd.xlane.f32.xlu0 %v1422_v57  ;;  %1860 = vmatpush3.msra.mxu1 %v1450_v2 }
 0x67c   : > { %v1424_v58 = vpop.xlane.xlu0 %1423 }
 0x67d   : > { %v1426_v59 = vmul.f32 0.03125, %v1424_v58 }
 0x67f   : > { %v1427_v60 = vsub.f32 %v1419_v29, %v1426_v59 }
 0x681   : > { %v1428_v61 = vmul.f32 %v1427_v60, %v1427_v60 }
 0x683   : > { %v1429_v62 = vsel %vm448_vm1, %v1428_v61, 0.0 }
 0x684   : > { %1430 = vadd.xlane.f32.xlu1 %v1429_v62 }
 0x70d   : > { %v1431_v9 = vpop.xlane.xlu1 %1430 }
 0x70e   : > { %v1432_v11 = vmul.f32 0.03125, %v1431_v9 }
 0x710   : > { %v1433_v12 = vadd.f32 1e-05, %v1432_v11 }
 0x712   : > { %1955 = vrsqrt.f32 %v1433_v12 }
 0x71f   : > { %v1956_v14 = vpop.eup %1955 }
 0x720   : > { %v1435_v17 = vmul.f32 %v1956_v14, %v1427_v60 }
 0x722   : > { %v1442_v20 = vmul.f32 %v1760_v16, %v1435_v17 }
 0x724   : > { %v1449_v21 = vadd.f32 %v1761_v19, %v1442_v20 }
 0x726   : > { %1862 = vmatmul.mubr.msk.f32.vlgmr.msra.gmra.mxu1 %vm448_vm1, %v1449_v21 }
 0x7e6   : > { %v1530_v13 = vpop.f32.mrf.mxu1 }
 0x7e7   : > { %v1531_v36 = vadd.f32 %v1762_v35, %v1530_v13 }
 0x7e8   : > { %v1863_v15 = vpop.f32.mrf.mxu1 }
 0x7e9   : > { %v1535_v37 = vmul.f32 0.70710677, %v1531_v36  ;;  %v1534_v39 = vmul.f32 0.5, %v1531_v36 }
 0x7eb   : > { %1957 = verf.f32 %v1535_v37 }
 0x7f8   : > { %v1958_v38 = vpop.eup %1957 }
 0x7f9   : > { %v1537_v40 = vadd.f32 1.0, %v1958_v38 }
 0x7fb   : > { %v1538_v41 = vmul.f32 %v1537_v40, %v1534_v39 }
 0x7fd   : > { %1897 = vmatmul.mubr.f32.vlgmr.msra.gmra.mxu0 %v1538_v41 }
 0x8bd   : > { %v1628_v1 = vpop.f32.mrf.mxu0 }
 0x8be   : > { %v1629_v43 = vadd.f32 %v1764_v42, %v1628_v1 }
 0x8bf   : > { %v1898_v44 = vpop.f32.mrf.mxu0 }
 0x8c0   : > { %v1632_v45 = vadd.f32 %v1629_v43, %v1449_v21 }
 0x8c2   : > { %v1635_v46 = vsel %vm448_vm1, %v1632_v45, 0.0 }
 0x8c3   : > { %1636 = vadd.xlane.f32.xlu0 %v1635_v46 }
 0x94c   : > { %v1637_v47 = vpop.xlane.xlu0 %1636 }
 0x94d   : > { %v1638_v48 = vmul.f32 0.03125, %v1637_v47 }
 0x94f   : > { %v1639_v49 = vsub.f32 %v1632_v45, %v1638_v48 }
 0x951   : > { %v1640_v50 = vmul.f32 %v1639_v49, %v1639_v49 }
 0x953   : > { %v1641_v10 = vsel %vm448_vm1, %v1640_v50, 0.0 }
 0x954   : > { %1642 = vadd.xlane.f32.xlu0 %v1641_v10 }
 0x9dd   : > { %v1643_v51 = vpop.xlane.xlu0 %1642 }
 0x9de   : > { %v1644_v8 = vmul.f32 0.03125, %v1643_v51 }
 0x9e0   : > { %v1645_v52 = vadd.f32 1e-05, %v1644_v8 }
 0x9e2   : > { %1959 = vrsqrt.f32 %v1645_v52 }
 0x9ef   : > { %v1960_v53 = vpop.eup %1959 }
 0x9f0   : > { %v1647_v54 = vmul.f32 %v1960_v53, %v1639_v49 }
 0x9f2   : > { %v1654_v56 = vmul.f32 %v1765_v18, %v1647_v54 }
 0x9f4   : > { %v1661_v29 = vadd.f32 %v1766_v55, %v1654_v56 }
 0x9f6   : > { %1662 = vst.msk [vmem:[%s431_s23] sm:$0xff] %vm448_vm1, %v1661_v29 }
 0x9f7   : > { %1974 = shalt.err (!%p1971_p3)
}
 0x9f8   : > { %s1975_s0 = scalar_lea.hbm %s1675_s2, 128  ;;  %s1979_s17 = scalar_lea.hbm %s2470_s13, 256 }
 0x9f9   : > { %p1976_p4 = scmp.ne.s32.totalorder %s1675_s2, %s1975_s0  ;;  %p1980_p9 = scmp.lt.s32.totalorder %s1675_s2, %s2470_s13 }
 0x9fa   : > { %p1981_p10 = scmp.lt.s32.totalorder %s1979_s17, %s1975_s0 }
 0x9fb   : > { %p1977_p7 = pnand %p1976_p4, %p2141_p5 }
 0x9fc   : > { %p1982_p11 = por %p1981_p10, %p1980_p9 }
 0x9fd   : > { %p1978_p8 = pneg %p1977_p7 }
 0x9ff   : > { %p1983_p12 = pnand %p1982_p11, %p1978_p8 }
 0xa01   : > { %1986 = shalt.err (!%p1983_p12)
}
 0xa02   : > { %1899 = dma.vmem_to_hbm [thread:$0]  (%p2141_p5), %s1678_s24, 128, %s1675_s2, %s1664_s3  }
 0xa03 PF: > { %p1905_p13 = scmp.ge.s32.totalorder %s2021_s28, 2  ;;  %s1689_s23 = sand.u32 1, %s2009_s25  }
 0xa04   : > { %s1690_s15 = scalar_lea.sflag [#allocation3], %s1689_s23 }
 0xa05   : > { %p1902_p0 = pnand %p1905_p13, %p2145_p6 }
 0xa07   : > { %p1903_p1 = pneg %p1902_p0 }
 0xa09   : > { %2004 = dma.done.wait (%p1903_p1), %s1690_s15, 128  }
 0xa0a   : > { %2006 = vsyncadd (%p1903_p1), %s1690_s15, 4294967168  ;;  %s2482_s16 = sld [smem:[#allocation5_spill]]  ;;  %p23_p2 = scmp.ge.s32.totalorder %s2128_s14, 4  }
 0xa0b   : > { %s2483_s25 = smov %s2013_s26  ;;  %s2484_s26 = smov %s2017_s27 }
 0xa0c   : > { %s2486_s28 = smov %s2128_s14  ;;  %25 = sbr.rel (!%p23_p2) target bundleno = 8 (0x8), region = 107 }
 0xa10   : > { %s2485_s27 = smov %s2482_s16 }
 0xa11   :  { %1695 = vsyncpa [#allocation3], 1 }
 0xa12   :  { %1697 = vsyncpa [#allocation3 + $0x1], 1 }

</bundles_post_ra>
